<compile_context>
chip_gen: v7x
topology: tpu7x:2x2x1
jax: 0.10.0
libtpu: 0.0.40
codegen_flags: <defaults>
</compile_context>

<pallas_src>
import jax
import jax.numpy as jnp
from jax.experimental import pallas as pl
from jax.experimental.pallas import tpu as pltpu

FEAT_IN = 1024  # fixed by the module: first projector layer is nn.Linear(1024, output_size)


def projector_kernel(x_ref, w1_ref, t1_ref, w2_ref, t2_ref, w3_ref, o_ref):
    """One grid step processes a (tm, 1024) tile of rows (branches merged into M).

    x_ref : (tm, 1024) bf16 tile of flattened backbone features
    w*    : bf16 Linear weights stored (in_dim, out_dim); BN scale pre-folded
            into w1/w2 on the host
    t*    : folded eval-mode BatchNorm1d shift, (1, D) f32
    o_ref : (tm, D) f32 projector output
    """
    # Linear 1024->D (BN1 scale folded into W1), f32 MXU accumulation.
    h = jnp.dot(x_ref[...], w1_ref[...], preferred_element_type=jnp.float32)
    # BN1 shift + ReLU in f32, recast to bf16 for the next MXU op.
    h = jnp.maximum(h + t1_ref[...], 0.0).astype(jnp.bfloat16)
    # Linear D->D (BN2 scale folded into W2).
    h = jnp.dot(h, w2_ref[...], preferred_element_type=jnp.float32)
    h = jnp.maximum(h + t2_ref[...], 0.0).astype(jnp.bfloat16)
    # Final Linear D->D, f32 output.
    o_ref[...] = jnp.dot(h, w3_ref[...], preferred_element_type=jnp.float32)


def _pick_tile_m(m, max_tile=512):
    """Largest multiple-of-8 divisor of m that is <= max_tile (else full m)."""
    if m <= max_tile or m % 8 != 0:
        return m
    for tm in range(max_tile - max_tile % 8, 0, -8):
        if m % tm == 0:
            return tm
    return m


def barlowtwins_forward(feats, params):
    """feats: (3, N, 1024) stacked [anchor, positive, negative] backbone features.

    Returns (anchor_out, positive_out, negative_out), each (N, D) f32.
    """
    three, n, fin = feats.shape
    assert three == 3 and fin == FEAT_IN
    d = params["w1"].shape[1]

    # Merge the three branches into one M = 3N row dimension (free reshape).
    m = 3 * n
    x = feats.reshape(m, fin).astype(jnp.bfloat16)
    tm = _pick_tile_m(m)
    grid = (m // tm,)

    w1 = params["w1"]  # (1024, D) bf16, BN1 scale folded
    t1 = params["t1"]  # (1, D)   f32
    w2 = params["w2"]  # (D, D)   bf16, BN2 scale folded
    t2 = params["t2"]  # (1, D)   f32
    w3 = params["w3"]  # (D, D)   bf16

    flops = 2 * m * (fin * d + 2 * d * d)
    bytes_accessed = (
        m * fin * 2                      # bf16 activations in
        + (fin * d + 2 * d * d) * 2      # bf16 weights
        + 2 * d * 4                      # f32 BN shifts
        + m * d * 4                      # f32 output
    )

    def invariant(shape):
        return pl.BlockSpec(shape, lambda i: (0,) * len(shape))

    out = pl.pallas_call(
        projector_kernel,
        out_shape=jax.ShapeDtypeStruct((m, d), jnp.float32),
        grid=grid,
        in_specs=[
            pl.BlockSpec((tm, fin), lambda i: (i, 0)),   # row tile of merged features
            invariant((fin, d)),                         # W1 (scale-folded)
            invariant((1, d)),                           # BN1 shift
            invariant((d, d)),                           # W2 (scale-folded)
            invariant((1, d)),                           # BN2 shift
            invariant((d, d)),                           # W3
        ],
        out_specs=pl.BlockSpec((tm, d), lambda i: (i, 0)),
        compiler_params=pltpu.CompilerParams(
            dimension_semantics=("parallel",)),
        cost_estimate=pl.CostEstimate(
            flops=flops, transcendentals=0, bytes_accessed=bytes_accessed),
    )(x, w1, t1, w2, t2, w3)

    out = out.reshape(3, n, d)
    return out[0], out[1], out[2]


def init_raw_params(key, output_size):
    """Deterministic raw (unfolded, f32) parameters matching the module's shapes."""
    k = jax.random.split(key, 11)
    # nn.Linear(in, out, bias=False).weight has shape (out, in); we store W.T.
    w1 = (jax.random.normal(k[0], (FEAT_IN, output_size), jnp.float32)
          * (1.0 / jnp.sqrt(FEAT_IN)))
    w2 = (jax.random.normal(k[1], (output_size, output_size), jnp.float32)
          * (1.0 / jnp.sqrt(output_size)))
    w3 = (jax.random.normal(k[2], (output_size, output_size), jnp.float32)
          * (1.0 / jnp.sqrt(output_size)))

    def bn_raw(kg, kb, km, kv):
        gamma = 1.0 + 0.1 * jax.random.normal(kg, (output_size,), jnp.float32)
        beta = 0.1 * jax.random.normal(kb, (output_size,), jnp.float32)
        rmean = 0.1 * jax.random.normal(km, (output_size,), jnp.float32)
        rvar = 1.0 + 0.1 * jax.random.uniform(kv, (output_size,), jnp.float32)
        return gamma, beta, rmean, rvar

    bn1 = bn_raw(k[3], k[4], k[5], k[6])
    bn2 = bn_raw(k[7], k[8], k[9], k[10])   # independent keys (no reuse)
    return {"w1": w1, "w2": w2, "w3": w3, "bn1": bn1, "bn2": bn2}


def fold_params(raw, eps=1e-5):
    """Fold eval-mode BN scale into the preceding Linear weights; cast to bf16."""
    def bn_fold(bn):
        gamma, beta, rmean, rvar = bn
        scale = gamma / jnp.sqrt(rvar + eps)
        shift = beta - rmean * scale
        return scale, shift

    s1, t1 = bn_fold(raw["bn1"])
    s2, t2 = bn_fold(raw["bn2"])
    d = raw["w1"].shape[1]
    return {
        "w1": (raw["w1"] * s1[None, :]).astype(jnp.bfloat16),
        "t1": t1.reshape(1, d),
        "w2": (raw["w2"] * s2[None, :]).astype(jnp.bfloat16),
        "t2": t2.reshape(1, d),
        "w3": raw["w3"].astype(jnp.bfloat16),
    }


def reference_forward(feats, p):
    """Pure-JAX reference matching the kernel's bf16/f32 mixed-precision chain."""
    def proj(x):
        xb = x.astype(jnp.bfloat16)
        h = jnp.dot(xb, p["w1"], preferred_element_type=jnp.float32)
        h = jnp.maximum(h + p["t1"], 0.0).astype(jnp.bfloat16)
        h = jnp.dot(h, p["w2"], preferred_element_type=jnp.float32)
        h = jnp.maximum(h + p["t2"], 0.0).astype(jnp.bfloat16)
        return jnp.dot(h, p["w3"], preferred_element_type=jnp.float32)
    return proj(feats[0]), proj(feats[1]), proj(feats[2])


if __name__ == "__main__":
    key = jax.random.PRNGKey(0)
    k_feat, k_param = jax.random.split(key)

    N = 8            # batch size
    OUTPUT_SIZE = 128

    # Stand-in for flattened backbone extract_features after Dropout(eval) +
    # reshape(n, -1): shape (3, N, 1024) for [anchor, positive, negative].
    feats = jax.random.normal(k_feat, (3, N, FEAT_IN), jnp.float32)
    raw = init_raw_params(k_param, OUTPUT_SIZE)
    params = fold_params(raw)

    anchor_out, positive_out, negative_out = jax.block_until_ready(
        barlowtwins_forward(feats, params))

    ref_a, ref_p, ref_n = reference_forward(feats, params)
    assert jnp.allclose(anchor_out, ref_a, atol=2e-2, rtol=2e-2)
    assert jnp.allclose(positive_out, ref_p, atol=2e-2, rtol=2e-2)
    assert jnp.allclose(negative_out, ref_n, atol=2e-2, rtol=2e-2)

    print("KERNEL_OK")
</pallas_src>

<mosaic_0001>
module attributes {stable_mosaic.version = 11 : i64} {
  func.func @projector_kernel(%arg0: i32, %arg1: memref<24x1024xbf16, #tpu.memory_space<vmem>>, %arg2: memref<1024x128xbf16, #tpu.memory_space<vmem>>, %arg3: memref<1x128xf32, #tpu.memory_space<vmem>>, %arg4: memref<128x128xbf16, #tpu.memory_space<vmem>>, %arg5: memref<1x128xf32, #tpu.memory_space<vmem>>, %arg6: memref<128x128xbf16, #tpu.memory_space<vmem>>, %arg7: memref<24x128xf32, #tpu.memory_space<vmem>>) attributes {dimension_semantics = [#tpu.dimension_semantics<parallel>], iteration_bounds = array<i64: 1>, scalar_prefetch = 0 : i64, scratch_operands = 0 : i64, tpu.core_type = #tpu.core_type<tc>, window_params = [{transform_indices = @transform_0, window_bounds = array<i64: 24, 1024>}, {pipeline_mode = #tpu.pipeline_mode<synchronous>, transform_indices = @transform_1, window_bounds = array<i64: 1024, 128>}, {pipeline_mode = #tpu.pipeline_mode<synchronous>, transform_indices = @transform_2, window_bounds = array<i64: 1, 128>}, {pipeline_mode = #tpu.pipeline_mode<synchronous>, transform_indices = @transform_3, window_bounds = array<i64: 128, 128>}, {pipeline_mode = #tpu.pipeline_mode<synchronous>, transform_indices = @transform_4, window_bounds = array<i64: 1, 128>}, {pipeline_mode = #tpu.pipeline_mode<synchronous>, transform_indices = @transform_5, window_bounds = array<i64: 128, 128>}, {transform_indices = @transform_6, window_bounds = array<i64: 24, 128>}]} {
    %c0 = arith.constant 0 : index
    %c0_0 = arith.constant 0 : index
    %0 = vector.load %arg1[%c0, %c0_0] : memref<24x1024xbf16, #tpu.memory_space<vmem>>, vector<24x1024xbf16>
    %c0_1 = arith.constant 0 : index
    %c0_2 = arith.constant 0 : index
    %1 = vector.load %arg2[%c0_1, %c0_2] : memref<1024x128xbf16, #tpu.memory_space<vmem>>, vector<1024x128xbf16>
    %cst = arith.constant dense<0.000000e+00> : vector<24x128xf32>
    %2 = tpu.matmul %0, %1, %cst {dimension_numbers = #tpu.dot_dimension_numbers<[1], [0], [0], [1], [0, 0, 1, 1], [], []>} : vector<24x1024xbf16>, vector<1024x128xbf16>, vector<24x128xf32> -> vector<24x128xf32>
    %c0_3 = arith.constant 0 : index
    %c0_4 = arith.constant 0 : index
    %3 = vector.load %arg3[%c0_3, %c0_4] : memref<1x128xf32, #tpu.memory_space<vmem>>, vector<1x128xf32>
    %4 = vector.broadcast %3 : vector<1x128xf32> to vector<24x128xf32>
    %5 = arith.addf %2, %4 : vector<24x128xf32>
    %cst_5 = arith.constant 0.000000e+00 : f32
    %6 = vector.broadcast %cst_5 : f32 to vector<24x128xf32>
    %7 = arith.maximumf %5, %6 : vector<24x128xf32>
    %8 = arith.truncf %7 : vector<24x128xf32> to vector<24x128xbf16>
    %c0_6 = arith.constant 0 : index
    %c0_7 = arith.constant 0 : index
    %9 = vector.load %arg4[%c0_6, %c0_7] : memref<128x128xbf16, #tpu.memory_space<vmem>>, vector<128x128xbf16>
    %cst_8 = arith.constant dense<0.000000e+00> : vector<24x128xf32>
    %10 = tpu.matmul %8, %9, %cst_8 {dimension_numbers = #tpu.dot_dimension_numbers<[1], [0], [0], [1], [0, 0, 1, 1], [], []>} : vector<24x128xbf16>, vector<128x128xbf16>, vector<24x128xf32> -> vector<24x128xf32>
    %c0_9 = arith.constant 0 : index
    %c0_10 = arith.constant 0 : index
    %11 = vector.load %arg5[%c0_9, %c0_10] : memref<1x128xf32, #tpu.memory_space<vmem>>, vector<1x128xf32>
    %12 = vector.broadcast %11 : vector<1x128xf32> to vector<24x128xf32>
    %13 = arith.addf %10, %12 : vector<24x128xf32>
    %cst_11 = arith.constant 0.000000e+00 : f32
    %14 = vector.broadcast %cst_11 : f32 to vector<24x128xf32>
    %15 = arith.maximumf %13, %14 : vector<24x128xf32>
    %16 = arith.truncf %15 : vector<24x128xf32> to vector<24x128xbf16>
    %c0_12 = arith.constant 0 : index
    %c0_13 = arith.constant 0 : index
    %17 = vector.load %arg6[%c0_12, %c0_13] : memref<128x128xbf16, #tpu.memory_space<vmem>>, vector<128x128xbf16>
    %cst_14 = arith.constant dense<0.000000e+00> : vector<24x128xf32>
    %18 = tpu.matmul %16, %17, %cst_14 {dimension_numbers = #tpu.dot_dimension_numbers<[1], [0], [0], [1], [0, 0, 1, 1], [], []>} : vector<24x128xbf16>, vector<128x128xbf16>, vector<24x128xf32> -> vector<24x128xf32>
    %c0_15 = arith.constant 0 : index
    %c0_16 = arith.constant 0 : index
    %19 = vector.load %arg7[%c0_15, %c0_16] : memref<24x128xf32, #tpu.memory_space<vmem>>, vector<24x128xf32>
    tpu.vector_store %arg7[%c0_15, %c0_16], %18 {strides = array<i32>} : memref<24x128xf32, #tpu.memory_space<vmem>>, vector<24x128xf32>,
    return
  }
  func.func @transform_0(%arg0: i32) -> (i32, i32) {
    %c0_i32 = arith.constant 0 : i32
    %c0_i32_0 = arith.constant 0 : i32
    return %arg0, %c0_i32 : i32, i32
  }
  func.func @transform_1(%arg0: i32) -> (i32, i32) {
    %c0_i32 = arith.constant 0 : i32
    %c0_i32_0 = arith.constant 0 : i32
    %c0_i32_1 = arith.constant 0 : i32
    return %c0_i32, %c0_i32_0 : i32, i32
  }
  func.func @transform_2(%arg0: i32) -> (i32, i32) {
    %c0_i32 = arith.constant 0 : i32
    %c0_i32_0 = arith.constant 0 : i32
    %c0_i32_1 = arith.constant 0 : i32
    return %c0_i32, %c0_i32_0 : i32, i32
  }
  func.func @transform_3(%arg0: i32) -> (i32, i32) {
    %c0_i32 = arith.constant 0 : i32
    %c0_i32_0 = arith.constant 0 : i32
    %c0_i32_1 = arith.constant 0 : i32
    return %c0_i32, %c0_i32_0 : i32, i32
  }
  func.func @transform_4(%arg0: i32) -> (i32, i32) {
    %c0_i32 = arith.constant 0 : i32
    %c0_i32_0 = arith.constant 0 : i32
    %c0_i32_1 = arith.constant 0 : i32
    return %c0_i32, %c0_i32_0 : i32, i32
  }
  func.func @transform_5(%arg0: i32) -> (i32, i32) {
    %c0_i32 = arith.constant 0 : i32
    %c0_i32_0 = arith.constant 0 : i32
    %c0_i32_1 = arith.constant 0 : i32
    return %c0_i32, %c0_i32_0 : i32, i32
  }
  func.func @transform_6(%arg0: i32) -> (i32, i32) {
    %c0_i32 = arith.constant 0 : i32
    %c0_i32_0 = arith.constant 0 : i32
    return %arg0, %c0_i32 : i32, i32
  }
}

</mosaic_0001>

<bundles_post_ra>
// kernel: tpu_custom_call.1
= control target key start
LH: loop header
LB: loop body
LE: loop exit
PB: predicated region body
PF: predicated region fallthrough
CT: control target
= control target key end

     0   :  { %11 = vsyncpa [#allocation3], 0  ;;  %s1749_s0 = inlined_call_operand.hbm [shape: bf16[24,1024], index: 0, kind: input, shape index: {}]   ;;  %s1750_s1 = inlined_call_operand.hbm [shape: bf16[1024,128], index: 1, kind: input, shape index: {}]   ;;  %s1751_s2 = inlined_call_operand.vmem [shape: f32[1,128], index: 2, kind: input, shape index: {}]   ;;  %s1752_s3 = inlined_call_operand.hbm [shape: bf16[128,128], index: 3, kind: input, shape index: {}]   ;;  %s1753_s4 = inlined_call_operand.vmem [shape: f32[1,128], index: 4, kind: input, shape index: {}]   ;;  %s1754_s5 = inlined_call_operand.hbm [shape: bf16[128,128], index: 5, kind: input, shape index: {}]   ;;  %s1755_s6 = inlined_call_operand.hbm [shape: f32[24,128], index: 6, kind: output, shape index: {}]  }
   0x1   :  { %12 = vsyncpa [#allocation6], 0 }
   0x2   :  { %13 = vsyncpa [#allocation9], 0 }
   0x3   :  { %14 = vsyncpa [#allocation4], 0  ;;  %s1621_s21 = smov [#allocation5]   ;;  %s1503_s25 = scalar_lea.hbm %s1750_s1, 8192 }
   0x4   :  { %s32_s22 = sshll.u32 %s1621_s21, 4  ;;  %p1504_p0 = scmp.ne.s32.totalorder %s1750_s1, %s1503_s25  ;;  %s33_s22 = int_to_ptr.vmem [resolvable:$true] %s32_s22 }
   0x5   :  { %p1507_p1 = scmp.lt.u32.totalorder %s1503_s25, %s1750_s1 }
   0x7   :  { %p1509_p2 = pnand %p1507_p1, %p1504_p0 }
   0x9   :  { %1512 = shalt.err (!%p1509_p2)
}
   0xa   :  { %s1513_s30 = scalar_lea.vmem %s33_s22, 8192  ;;  %p1518_p4 = scmp.lt.s32.totalorder %s33_s22, %s33_s22 }
   0xb   :  { %p1514_p3 = scmp.ne.s32.totalorder %s33_s22, %s1513_s30  ;;  %p1519_p5 = scmp.lt.s32.totalorder %s1513_s30, %s1513_s30 }
   0xd   :  { %p1520_p6 = por %p1519_p5, %p1518_p4 }
   0xf   :  { %p1521_p7 = pnand %p1520_p6, %p1514_p3 }
  0x11   :  { %1524 = shalt.err (!%p1521_p7)
}
  0x12   :  { %s1622_s7 = smov 64   ;;  %s1623_s8 = smov 4  }
  0x13   :  { %38 = dma.hbm_to_vmem [thread:$0]  %s1750_s1, 8192, %s33_s22, [#allocation6], %s1622_s7, %s1622_s7, %s1623_s8  }
  0x14   :  { %s1624_s11 = smov [#allocation2]   ;;  %s1525_s15 = scalar_lea.hbm %s1749_s0, 1536 }
  0x15   :  { %s20_s12 = sshll.u32 %s1624_s11, 4  ;;  %p1526_p8 = scmp.ne.s32.totalorder %s1749_s0, %s1525_s15  ;;  %s21_s12 = int_to_ptr.vmem [resolvable:$true] %s20_s12 }
  0x16   :  { %p1529_p9 = scmp.lt.u32.totalorder %s1525_s15, %s1749_s0 }
  0x18   :  { %p1531_p10 = pnand %p1529_p9, %p1526_p8 }
  0x1a   :  { %1534 = shalt.err (!%p1531_p10)
}
  0x1b   :  { %s1535_s20 = scalar_lea.vmem %s21_s12, 1536  ;;  %p1540_p12 = scmp.lt.s32.totalorder %s21_s12, %s21_s12 }
  0x1c   :  { %p1536_p11 = scmp.ne.s32.totalorder %s21_s12, %s1535_s20  ;;  %p1541_p13 = scmp.lt.s32.totalorder %s1535_s20, %s1535_s20 }
  0x1e   :  { %p1542_p0 = por %p1541_p13, %p1540_p12 }
  0x20   :  { %p1543_p1 = pnand %p1542_p0, %p1536_p11 }
  0x22   :  { %1546 = shalt.err (!%p1543_p1)
}
  0x23   :  { %s1625_s1 = smov 512   ;;  %s1626_s21 = smov 32  }
  0x24   :  { %26 = dma.hbm_to_vmem [thread:$0]  %s1749_s0, 1536, %s21_s12, [#allocation3], %s1625_s1, %s1625_s1, %s1626_s21  }
  0x25   :  { %s1627_s24 = smov [#allocation7]   ;;  %s1628_s26 = smov [#allocation8]  }
  0x26   :  { %s46_s25 = sshll.u32 %s1627_s24, 4  ;;  %s60_s27 = sshll.u32 %s1628_s26, 4  ;;  %s47_s25 = int_to_ptr.vmem [resolvable:$true] %s46_s25  ;;  %s1694_s27 = int_to_ptr.vmem [resolvable:$true] %s60_s27 }
  0x27   :  { %s1547_s30 = scalar_lea.hbm %s1752_s3, 1024 }
  0x28   :  { %p1548_p2 = scmp.ne.s32.totalorder %s1752_s3, %s1547_s30  ;;  %p1551_p3 = scmp.lt.u32.totalorder %s1547_s30, %s1752_s3 }
  0x2a   :  { %p1553_p4 = pnand %p1551_p3, %p1548_p2 }
  0x2c   :  { %1556 = shalt.err (!%p1553_p4)
}
  0x2d   :  { %s1557_s0 = scalar_lea.vmem %s47_s25, 1024  ;;  %p1562_p6 = scmp.lt.s32.totalorder %s47_s25, %s47_s25 }
  0x2e   :  { %p1558_p5 = scmp.ne.s32.totalorder %s47_s25, %s1557_s0  ;;  %p1563_p7 = scmp.lt.s32.totalorder %s1557_s0, %s1557_s0 }
  0x30   :  { %p1564_p8 = por %p1563_p7, %p1562_p6 }
  0x32   :  { %p1565_p9 = pnand %p1564_p8, %p1558_p5 }
  0x34   :  { %1568 = shalt.err (!%p1565_p9)
}
  0x35   :  { %52 = dma.hbm_to_vmem [thread:$0]  %s1752_s3, 1024, %s47_s25, [#allocation6], %s1622_s7, %s1622_s7, %s1623_s8  }
  0x36   :  { %s1569_s17 = scalar_lea.hbm %s1754_s5, 1024 }
  0x37   :  { %p1570_p10 = scmp.ne.s32.totalorder %s1754_s5, %s1569_s17  ;;  %p1573_p11 = scmp.lt.u32.totalorder %s1569_s17, %s1754_s5 }
  0x39   :  { %p1575_p12 = pnand %p1573_p11, %p1570_p10 }
  0x3b   :  { %1578 = shalt.err (!%p1575_p12)
}
  0x3c   :  { %s1579_s21 = scalar_lea.vmem %s1694_s27, 1024  ;;  %p1584_p0 = scmp.lt.s32.totalorder %s1694_s27, %s1694_s27 }
  0x3d   :  { %p1580_p13 = scmp.ne.s32.totalorder %s1694_s27, %s1579_s21  ;;  %p1585_p1 = scmp.lt.s32.totalorder %s1579_s21, %s1579_s21 }
  0x3f   :  { %p1586_p2 = por %p1585_p1, %p1584_p0 }
  0x41   :  { %p1587_p3 = pnand %p1586_p2, %p1580_p13 }
  0x43   :  { %1590 = shalt.err (!%p1587_p3)
}
  0x44   :  { %66 = dma.hbm_to_vmem [thread:$0]  %s1754_s5, 1024, %s1694_s27, [#allocation9], %s1622_s7, %s1622_s7, %s1623_s8  }
  0x45   :  { %1613 = dma.done.wait [#allocation3], 1536  }
  0x46   :  { %1614 = vsyncadd [#allocation3], 4294965760 }
  0x47   :  { %1615 = dma.done.wait [#allocation6], 9216  }
  0x48   :  { %1616 = vsyncadd [#allocation6], 4294958080 }
  0x49   :  { %1617 = dma.done.wait [#allocation9], 1024  }
  0x4a   :  { %1618 = vsyncadd [#allocation9], 4294966272  ;;  %v1415_v0 = vld [vmem:[#allocation5 + $0x40] sm:$0xff]   ;;  %v1419_v4 = vld [vmem:[#allocation5 + $0x48] sm:$0xff]   ;;  %s1629_s23 = smov [#allocation10]  }
  0x4b   :  { %v1416_v1 = vld [vmem:[#allocation5 + $0xc0] sm:$0xff]   ;;  %1232 = vmatprep.subr.bf16.mxu0 %v1415_v0  ;;  %v1420_v5 = vld [vmem:[#allocation5 + $0xc8] sm:$0xff]   ;;  %v1423_v8 = vld [vmem:[#allocation5 + $0x50] sm:$0xff]   ;;  %s1120_s24 = sshll.u32 %s1629_s23, 4  ;;  %s1121_s24 = int_to_ptr.vmem [resolvable:$true] %s1120_s24 }
  0x4c   :  { %v1417_v2 = vld [vmem:[#allocation5] sm:$0xff]   ;;  %1260 = vmatprep.subr.bf16.mxu1 %v1416_v1  ;;  %v1421_v6 = vld [vmem:[#allocation5 + $0x8] sm:$0xff]   ;;  %v1424_v9 = vld [vmem:[#allocation5 + $0xd0] sm:$0xff]   ;;  %p1596_p5 = scmp.lt.s32.totalorder %s1121_s24, %s1121_s24 }
  0x4d   :  { %v1418_v3 = vld [vmem:[#allocation5 + $0x80] sm:$0xff]   ;;  %1233 = vmatpush3.bf16.msra.mxu0 %v1417_v2  ;;  %v1422_v7 = vld [vmem:[#allocation5 + $0x88] sm:$0xff]   ;;  %v1425_v10 = vld [vmem:[#allocation5 + $0x10] sm:$0xff]  }
  0x4e   :  { %1261 = vmatpush3.bf16.msra.mxu1 %v1418_v3  ;;  %1234 = vmatprep.subr.bf16.mxu0 %v1419_v4  ;;  %v1426_v11 = vld [vmem:[#allocation5 + $0x90] sm:$0xff]   ;;  %v1427_v12 = vld [vmem:[#allocation5 + $0x58] sm:$0xff]   ;;  %v1431_v16 = vld [vmem:[#allocation5 + $0x60] sm:$0xff]  }
  0x4f   :  { %1262 = vmatprep.subr.bf16.mxu1 %v1420_v5  ;;  %v1428_v13 = vld [vmem:[#allocation5 + $0xd8] sm:$0xff]   ;;  %v1432_v17 = vld [vmem:[#allocation5 + $0xe0] sm:$0xff]   ;;  %v1435_v20 = vld [vmem:[#allocation5 + $0x68] sm:$0xff]  }
  0x50   :  { %v1429_v14 = vld [vmem:[#allocation5 + $0x18] sm:$0xff]   ;;  %v1433_v18 = vld [vmem:[#allocation5 + $0x20] sm:$0xff]   ;;  %v1436_v21 = vld [vmem:[#allocation5 + $0xe8] sm:$0xff]  }
  0x51   :  { %1235 = vmatpush3.bf16.msra.mxu0 %v1421_v6  ;;  %v1430_v15 = vld [vmem:[#allocation5 + $0x98] sm:$0xff]   ;;  %v1434_v19 = vld [vmem:[#allocation5 + $0xa0] sm:$0xff]   ;;  %v1437_v22 = vld [vmem:[#allocation5 + $0x28] sm:$0xff]  }
  0x52   :  { %1263 = vmatpush3.bf16.msra.mxu1 %v1422_v7  ;;  %1236 = vmatprep.subr.bf16.mxu0 %v1423_v8  ;;  %v1438_v23 = vld [vmem:[#allocation5 + $0xa8] sm:$0xff]   ;;  %v1439_v24 = vld [vmem:[#allocation5 + $0x70] sm:$0xff]   ;;  %v1443_v28 = vld [vmem:[#allocation5 + $0x78] sm:$0xff]  }
  0x53   :  { %1264 = vmatprep.subr.bf16.mxu1 %v1424_v9  ;;  %v1440_v25 = vld [vmem:[#allocation5 + $0xf0] sm:$0xff]   ;;  %v1444_v29 = vld [vmem:[#allocation5 + $0xf8] sm:$0xff]   ;;  %v80_v32 = vld [vmem:[#allocation2] sm:$0xff] }
  0x54   :  { %v1441_v26 = vld [vmem:[#allocation5 + $0x30] sm:$0xff]   ;;  %v1445_v30 = vld [vmem:[#allocation5 + $0x38] sm:$0xff]   ;;  %v84_v33 = vld [vmem:[#allocation2 + $0x20] sm:$0xff] }
  0x55   :  { %1237 = vmatpush3.bf16.msra.mxu0 %v1425_v10  ;;  %v1442_v27 = vld [vmem:[#allocation5 + $0xb0] sm:$0xff]   ;;  %v1446_v31 = vld [vmem:[#allocation5 + $0xb8] sm:$0xff]   ;;  %v81_v34 = vld [vmem:[#allocation2 + $0x8] sm:$0xff]  ;;  %v1135_v35 = vcombine.low %v80_v32, %v84_v33  ;;  %v1136_v36 = vcombine.high %v80_v32, %v84_v33 }
  0x56   :  { %1265 = vmatpush3.bf16.msra.mxu1 %v1426_v11  ;;  %1238 = vmatprep.subr.bf16.mxu0 %v1427_v12  ;;  %v85_v37 = vld [vmem:[#allocation2 + $0x28] sm:$0xff]  ;;  %v1447_v40 = vld [vmem:[#allocation5 + $0x140] sm:$0xff]   ;;  %v1455_v48 = vld [vmem:[#allocation5 + $0x150] sm:$0xff]  }
  0x57   :  { %1266 = vmatprep.subr.bf16.mxu1 %v1428_v13  ;;  %v1137_v38 = vcombine.low %v81_v34, %v85_v37  ;;  %v1138_v39 = vcombine.high %v81_v34, %v85_v37  ;;  %711 = vmatprep.mubr.bf16.mxu0 %v1136_v36  ;;  %v1448_v41 = vld [vmem:[#allocation5 + $0x1c0] sm:$0xff]   ;;  %v1451_v44 = vld [vmem:[#allocation5 + $0x148] sm:$0xff]   ;;  %v1456_v49 = vld [vmem:[#allocation5 + $0x1d0] sm:$0xff]  }
  0x58   :  { %v1449_v42 = vld [vmem:[#allocation5 + $0x100] sm:$0xff]   ;;  %v1452_v45 = vld [vmem:[#allocation5 + $0x1c8] sm:$0xff]   ;;  %v1457_v50 = vld [vmem:[#allocation5 + $0x110] sm:$0xff]  }
  0x59   :  { %1239 = vmatpush3.bf16.msra.mxu0 %v1429_v14  ;;  %759 = vmatprep.mubr.bf16.mxu1 %v1138_v39  ;;  %v1450_v43 = vld [vmem:[#allocation5 + $0x180] sm:$0xff]   ;;  %v1453_v46 = vld [vmem:[#allocation5 + $0x108] sm:$0xff]   ;;  %v1458_v51 = vld [vmem:[#allocation5 + $0x190] sm:$0xff]  }
  0x5a   :  { %1267 = vmatpush3.bf16.msra.mxu1 %v1430_v15  ;;  %1240 = vmatprep.subr.bf16.mxu0 %v1431_v16  ;;  %v1454_v47 = vld [vmem:[#allocation5 + $0x188] sm:$0xff]   ;;  %v1459_v52 = vld [vmem:[#allocation5 + $0x158] sm:$0xff]   ;;  %v1463_v56 = vld [vmem:[#allocation5 + $0x160] sm:$0xff]  }
  0x5b   :  { %1268 = vmatprep.subr.bf16.mxu1 %v1432_v17  ;;  %v1460_v53 = vld [vmem:[#allocation5 + $0x1d8] sm:$0xff]   ;;  %v1464_v57 = vld [vmem:[#allocation5 + $0x1e0] sm:$0xff]   ;;  %v1468_v62 = vld [vmem:[#allocation5 + $0x168] sm:$0xff]  }
  0x5c   :  { %v1461_v54 = vld [vmem:[#allocation5 + $0x118] sm:$0xff]   ;;  %v1465_v58 = vld [vmem:[#allocation5 + $0x120] sm:$0xff]   ;;  %v1469_v0 = vld [vmem:[#allocation5 + $0x1e8] sm:$0xff]  }
  0x5d   :  { %1241 = vmatpush3.bf16.msra.mxu0 %v1433_v18  ;;  %v1462_v55 = vld [vmem:[#allocation5 + $0x198] sm:$0xff]   ;;  %v1466_v59 = vld [vmem:[#allocation5 + $0x1a0] sm:$0xff]   ;;  %v1471_v1 = vld [vmem:[#allocation5 + $0x128] sm:$0xff]  }
  0x5e   :  { %1269 = vmatpush3.bf16.msra.mxu1 %v1434_v19  ;;  %1242 = vmatprep.subr.bf16.mxu0 %v1435_v20  ;;  %v88_v60 = vld [vmem:[#allocation2 + $0x40] sm:$0xff]  ;;  %v1472_v2 = vld [vmem:[#allocation5 + $0x1a8] sm:$0xff]   ;;  %v1475_v6 = vld [vmem:[#allocation5 + $0x170] sm:$0xff]  }
  0x5f   :  { %1270 = vmatprep.subr.bf16.mxu1 %v1436_v21  ;;  %v1144_v61 = vcombine.high %v88_v60, %v88_v60  ;;  %v1143_v63 = vcombine.low %v88_v60, %v88_v60  ;;  %v89_v3 = vld [vmem:[#allocation2 + $0x48] sm:$0xff]  ;;  %v1476_v7 = vld [vmem:[#allocation5 + $0x1f0] sm:$0xff]   ;;  %v1479_v10 = vld [vmem:[#allocation5 + $0x178] sm:$0xff]  }
  0x60   :  { %v1146_v4 = vcombine.high %v89_v3, %v89_v3  ;;  %v1145_v5 = vcombine.low %v89_v3, %v89_v3  ;;  %v1477_v8 = vld [vmem:[#allocation5 + $0x130] sm:$0xff]   ;;  %v1480_v11 = vld [vmem:[#allocation5 + $0x1f8] sm:$0xff]   ;;  %v1491_v32 = vld [vmem:[#allocation7 + $0x20] sm:$0xff]  }
  0x61   :  { %1243 = vmatpush3.bf16.msra.mxu0 %v1437_v22  ;;  %v1478_v9 = vld [vmem:[#allocation5 + $0x1b0] sm:$0xff]   ;;  %v1481_v12 = vld [vmem:[#allocation5 + $0x138] sm:$0xff]   ;;  %v1492_v33 = vld [vmem:[#allocation7 + $0x28] sm:$0xff]  }
  0x62   :  { %1271 = vmatpush3.bf16.msra.mxu1 %v1438_v23  ;;  %1244 = vmatprep.subr.bf16.mxu0 %v1439_v24  ;;  %v1482_v13 = vld [vmem:[#allocation5 + $0x1b8] sm:$0xff]   ;;  %v82_v14 = vld [vmem:[#allocation2 + $0x10] sm:$0xff]  ;;  %v1495_v36 = vld [vmem:[#allocation8] sm:$0xff]  }
  0x63   :  { %1272 = vmatprep.subr.bf16.mxu1 %v1440_v25  ;;  %v86_v15 = vld [vmem:[#allocation2 + $0x30] sm:$0xff]  ;;  %v83_v16 = vld [vmem:[#allocation2 + $0x18] sm:$0xff]  ;;  %v1496_v37 = vld [vmem:[#allocation8 + $0x8] sm:$0xff]  }
  0x64   :  { %v1139_v17 = vcombine.low %v82_v14, %v86_v15  ;;  %v1140_v18 = vcombine.high %v82_v14, %v86_v15  ;;  %v87_v19 = vld [vmem:[#allocation2 + $0x38] sm:$0xff]  ;;  %v90_v20 = vld [vmem:[#allocation2 + $0x50] sm:$0xff] }
  0x65   :  { %1245 = vmatpush3.bf16.msra.mxu0 %v1441_v26  ;;  %v91_v21 = vld [vmem:[#allocation2 + $0x58] sm:$0xff]  ;;  %v1141_v22 = vcombine.low %v83_v16, %v87_v19  ;;  %v1142_v23 = vcombine.high %v83_v16, %v87_v19  ;;  %v1148_v24 = vcombine.high %v90_v20, %v90_v20  ;;  %v1147_v26 = vcombine.low %v90_v20, %v90_v20  ;;  %v1493_v34 = vld [vmem:[#allocation7 + $0x30] sm:$0xff]  }
  0x66   :  { %1273 = vmatpush3.bf16.msra.mxu1 %v1442_v27  ;;  %1246 = vmatprep.subr.bf16.mxu0 %v1443_v28  ;;  %v1150_v25 = vcombine.high %v91_v21, %v91_v21  ;;  %v1149_v27 = vcombine.low %v91_v21, %v91_v21  ;;  %v1487_v28 = vld [vmem:[#allocation7] sm:$0xff]   ;;  %v1498_v39 = vld [vmem:[#allocation8 + $0x18] sm:$0xff]  }
  0x67   :  { %1274 = vmatprep.subr.bf16.mxu1 %v1444_v29  ;;  %v1488_v29 = vld [vmem:[#allocation7 + $0x8] sm:$0xff]  }
  0x69   :  { %1247 = vmatpush3.bf16.msra.mxu0 %v1445_v30  ;;  %v1489_v30 = vld [vmem:[#allocation7 + $0x10] sm:$0xff]  }
  0x6a   :  { %1275 = vmatpush3.bf16.msra.mxu1 %v1446_v31  ;;  %1288 = vmatprep.subr.bf16.mxu0 %v1447_v40  ;;  %v1490_v31 = vld [vmem:[#allocation7 + $0x18] sm:$0xff]   ;;  %v1499_v40 = vld [vmem:[#allocation8 + $0x20] sm:$0xff]  }
  0x6b   :  { %1316 = vmatprep.subr.bf16.mxu1 %v1448_v41  ;;  %v1500_v41 = vld [vmem:[#allocation8 + $0x28] sm:$0xff]  }
  0x6c   :  { %712 = vmatmul.mubr.bf16.vlgmr.msra.gmra.mrb[0].mxu0 %v1135_v35  ;;  %v1494_v35 = vld [vmem:[#allocation7 + $0x38] sm:$0xff]  }
  0x6d   :  { %760 = vmatmul.mubr.bf16.vlgmr.msra.gmra.mrb[0].mxu1 %v1137_v38  ;;  %1289 = vmatpush3.bf16.msra.mxu0 %v1449_v42  ;;  %v1497_v38 = vld [vmem:[#allocation8 + $0x10] sm:$0xff]  }
  0x6e   :  { %1317 = vmatpush3.bf16.msra.mxu1 %v1450_v43  ;;  %1290 = vmatprep.subr.bf16.mxu0 %v1451_v44  ;;  %v1134_v44 = vld [vmem:[%s1751_s2] ss:$0 sm:$0xff] }
  0x6f   :  { %1318 = vmatprep.subr.bf16.mxu1 %v1452_v45  ;;  %719 = vmatprep.mubr.bf16.mxu0 %v1144_v61 }
  0x70   :  { %767 = vmatprep.mubr.bf16.mxu1 %v1146_v4 }
  0x71   :  { %1291 = vmatpush3.bf16.msra.mxu0 %v1453_v46 }
  0x72   :  { %1319 = vmatpush3.bf16.msra.mxu1 %v1454_v47  ;;  %1292 = vmatprep.subr.bf16.mxu0 %v1455_v48 }
  0x73   :  { %1320 = vmatprep.subr.bf16.mxu1 %v1456_v49 }
  0x74   :  { %720 = vmatmul.mubr.bf16.gmra.mrb[4].mxu0 %v1143_v63 }
  0x75   :  { %1293 = vmatpush3.bf16.msra.mxu0 %v1457_v50  ;;  %768 = vmatmul.mubr.bf16.gmra.mrb[4].mxu1 %v1145_v5 }
  0x76   :  { %1321 = vmatpush3.bf16.msra.mxu1 %v1458_v51  ;;  %1294 = vmatprep.subr.bf16.mxu0 %v1459_v52 }
  0x77   :  { %1322 = vmatprep.subr.bf16.mxu1 %v1460_v53  ;;  %807 = vmatprep.mubr.bf16.mxu0 %v1140_v18 }
  0x78   :  { %855 = vmatprep.mubr.bf16.mxu1 %v1142_v23 }
  0x79   :  { %1295 = vmatpush3.bf16.msra.mxu0 %v1461_v54 }
  0x7a   :  { %1323 = vmatpush3.bf16.msra.mxu1 %v1462_v55  ;;  %1296 = vmatprep.subr.bf16.mxu0 %v1463_v56 }
  0x7b   :  { %1324 = vmatprep.subr.bf16.mxu1 %v1464_v57 }
  0x7d   :  { %1297 = vmatpush3.bf16.msra.mxu0 %v1465_v58 }
  0x7e   :  { %1325 = vmatpush3.bf16.msra.mxu1 %v1466_v59  ;;  %1298 = vmatprep.subr.bf16.mxu0 %v1468_v62 }
  0x7f   :  { %1326 = vmatprep.subr.bf16.mxu1 %v1469_v0 }
  0x81   :  { %1299 = vmatpush3.bf16.msra.mxu0 %v1471_v1 }
  0x82   :  { %1327 = vmatpush3.bf16.msra.mxu1 %v1472_v2  ;;  %1300 = vmatprep.subr.bf16.mxu0 %v1475_v6 }
  0x83   :  { %1328 = vmatprep.subr.bf16.mxu1 %v1476_v7 }
  0x85   :  { %1301 = vmatpush3.bf16.msra.mxu0 %v1477_v8 }
  0x86   :  { %1329 = vmatpush3.bf16.msra.mxu1 %v1478_v9  ;;  %1302 = vmatprep.subr.bf16.mxu0 %v1479_v10 }
  0x87   :  { %1330 = vmatprep.subr.bf16.mxu1 %v1480_v11 }
  0x89   :  { %1303 = vmatpush3.bf16.msra.mxu0 %v1481_v12 }
  0x8a   :  { %1331 = vmatpush3.bf16.msra.mxu1 %v1482_v13  ;;  %1364 = vmatprep.subr.bf16.mxu0 %v1487_v28 }
  0x8b   :  { %1384 = vmatprep.subr.bf16.mxu1 %v1495_v36 }
  0x8c   :  { %808 = vmatmul.mubr.bf16.vlgmr.msra.gmra.mrb[8].mxu0 %v1139_v17 }
  0x8d   :  { %856 = vmatmul.mubr.bf16.vlgmr.msra.gmra.mrb[8].mxu1 %v1141_v22  ;;  %815 = vmatprep.mubr.bf16.mxu0 %v1148_v24 }
  0x8e   :  { %863 = vmatprep.mubr.bf16.mxu1 %v1150_v25  ;;  %1365 = vmatpush3.bf16.msra.mxu0 %v1487_v28 }
  0x8f   :  { %1366 = vmatprep.subr.bf16.mxu0 %v1488_v29  ;;  %1385 = vmatpush3.bf16.msra.mxu1 %v1495_v36 }
  0x90   :  { %1386 = vmatprep.subr.bf16.mxu1 %v1496_v37 }
  0x92   :  { %1367 = vmatpush3.bf16.msra.mxu0 %v1488_v29 }
  0x93   :  { %1368 = vmatprep.subr.bf16.mxu0 %v1489_v30  ;;  %1387 = vmatpush3.bf16.msra.mxu1 %v1496_v37 }
  0x94   :  { %816 = vmatmul.mubr.bf16.gmra.mrb[12].mxu0 %v1147_v26  ;;  %1388 = vmatprep.subr.bf16.mxu1 %v1497_v38 }
  0x95   :  { %864 = vmatmul.mubr.bf16.gmra.mrb[12].mxu1 %v1149_v27 }
  0x96   :  { %1369 = vmatpush3.bf16.msra.mxu0 %v1489_v30 }
  0x97   :  { %1370 = vmatprep.subr.bf16.mxu0 %v1490_v31  ;;  %1389 = vmatpush3.bf16.msra.mxu1 %v1497_v38 }
  0x98   :  { %1390 = vmatprep.subr.bf16.mxu1 %v1498_v39 }
  0x9a   :  { %1371 = vmatpush3.bf16.msra.mxu0 %v1490_v31 }
  0x9b   :  { %1372 = vmatprep.subr.bf16.mxu0 %v1491_v32  ;;  %1391 = vmatpush3.bf16.msra.mxu1 %v1498_v39 }
  0x9c   :  { %1392 = vmatprep.subr.bf16.mxu1 %v1499_v40 }
  0x9e   :  { %1373 = vmatpush3.bf16.msra.mxu0 %v1491_v32 }
  0x9f   :  { %1374 = vmatprep.subr.bf16.mxu0 %v1492_v33  ;;  %1393 = vmatpush3.bf16.msra.mxu1 %v1499_v40  ;;  %v1501_v40 = vld [vmem:[#allocation8 + $0x30] sm:$0xff]  }
  0xa0   :  { %1394 = vmatprep.subr.bf16.mxu1 %v1500_v41 }
  0xa2   :  { %1375 = vmatpush3.bf16.msra.mxu0 %v1492_v33 }
  0xa3   :  { %1376 = vmatprep.subr.bf16.mxu0 %v1493_v34  ;;  %1395 = vmatpush3.bf16.msra.mxu1 %v1500_v41  ;;  %v1502_v41 = vld [vmem:[#allocation8 + $0x38] sm:$0xff]  }
  0xa4   :  { %1396 = vmatprep.subr.bf16.mxu1 %v1501_v40 }
  0xa6   :  { %1377 = vmatpush3.bf16.msra.mxu0 %v1493_v34 }
  0xa7   :  { %1378 = vmatprep.subr.bf16.mxu0 %v1494_v35  ;;  %1397 = vmatpush3.bf16.msra.mxu1 %v1501_v40 }
  0xa8   :  { %1398 = vmatprep.subr.bf16.mxu1 %v1502_v41 }
  0xaa   :  { %1379 = vmatpush3.bf16.msra.mxu0 %v1494_v35 }
  0xab   :  { %1399 = vmatpush3.bf16.msra.mxu1 %v1502_v41 }
 0x13f   :  { %v1248_v42 = vpop.f32.mrb[0].mxu0 }
 0x140   :  { %v1276_v43 = vpop.f32.mrb[0].mxu1  ;;  %v1249_v45 = vpop.f32.mrb[1].mxu0 }
 0x141   :  { %v1250_v46 = vadd.f32 %v1249_v45, %v1248_v42  ;;  %v1277_v47 = vpop.f32.mrb[1].mxu1  ;;  %v1251_v48 = vpop.f32.mrb[2].mxu0  ;;  %v1215_v42 = vld [vmem:[%s1753_s4] ss:$0 sm:$0xff]  ;;  %s1591_s4 = scalar_lea.vmem %s1121_s24, 384 }
 0x142   :  { %v1278_v49 = vadd.f32 %v1277_v47, %v1276_v43  ;;  %v1279_v50 = vpop.f32.mrb[2].mxu1  ;;  %v1252_v51 = vpop.f32.mrb[3].mxu0  ;;  %p1592_p4 = scmp.ne.s32.totalorder %s1121_s24, %s1591_s4  ;;  %p1597_p6 = scmp.lt.s32.totalorder %s1591_s4, %s1591_s4 }
 0x143   :  { %v714_v52 = vadd.f32 %v1250_v46, %v1134_v44  ;;  %v1253_v53 = vadd.f32 %v1252_v51, %v1251_v48  ;;  %v1280_v54 = vpop.f32.mrb[3].mxu1 }
 0x144   :  { %v1281_v55 = vadd.f32 %v1280_v54, %v1279_v50  ;;  %p1598_p7 = por %p1597_p6, %p1596_p5 }
 0x145   :  { %v762_v56 = vadd.f32 %v1278_v49, %v714_v52  ;;  %v717_v57 = vadd.f32 %v1253_v53, %v1134_v44 }
 0x146   :  { %p1599_p8 = pnand %p1598_p7, %p1592_p4 }
 0x147   :  { %v765_v58 = vadd.f32 %v1281_v55, %v717_v57  ;;  %v1254_v59 = vpop.f32.mrb[4].mxu0 }
 0x148   :  { %v1255_v60 = vpop.f32.mrb[5].mxu0  ;;  %v1282_v1 = vpop.f32.mrb[4].mxu1 }
 0x149   :  { %v1256_v61 = vadd.f32 %v1255_v60, %v1254_v59  ;;  %v1257_v62 = vpop.f32.mrb[6].mxu0  ;;  %v1283_v2 = vpop.f32.mrb[5].mxu1 }
 0x14a   :  { %v1258_v63 = vpop.f32.mrb[7].mxu0  ;;  %v1284_v3 = vadd.f32 %v1283_v2, %v1282_v1  ;;  %v1285_v4 = vpop.f32.mrb[6].mxu1 }
 0x14b   :  { %v722_v0 = vadd.f32 %v1256_v61, %v1134_v44  ;;  %v1286_v5 = vpop.f32.mrb[7].mxu1 }
 0x14d   :  { %v770_v6 = vadd.f32 %v1284_v3, %v722_v0 }
 0x15f   :  { %v1304_v7 = vpop.f32.mrb[8].mxu0 }
 0x160   :  { %v1332_v8 = vpop.f32.mrb[8].mxu1  ;;  %v1305_v9 = vpop.f32.mrb[9].mxu0 }
 0x161   :  { %v1306_v10 = vadd.f32 %v1305_v9, %v1304_v7  ;;  %v1333_v11 = vpop.f32.mrb[9].mxu1  ;;  %v1307_v12 = vpop.f32.mrb[10].mxu0 }
 0x162   :  { %v1334_v13 = vadd.f32 %v1333_v11, %v1332_v8  ;;  %v1335_v14 = vpop.f32.mrb[10].mxu1  ;;  %v1308_v15 = vpop.f32.mrb[11].mxu0 }
 0x163   :  { %v810_v16 = vadd.f32 %v1306_v10, %v762_v56  ;;  %v1309_v17 = vadd.f32 %v1308_v15, %v1307_v12  ;;  %v1336_v18 = vpop.f32.mrb[11].mxu1 }
 0x164   :  { %v1337_v19 = vadd.f32 %v1336_v18, %v1335_v14 }
 0x165   :  { %v858_v20 = vadd.f32 %v1334_v13, %v810_v16  ;;  %v813_v21 = vadd.f32 %v1309_v17, %v765_v58 }
 0x167   :  { %v861_v22 = vadd.f32 %v1337_v19, %v813_v21  ;;  %v1310_v23 = vpop.f32.mrb[12].mxu0  ;;  %v871_v26 = vmax.f32 %v858_v20, 0.0 }
 0x168   :  { %v1338_v24 = vpop.f32.mrb[12].mxu1  ;;  %v1311_v25 = vpop.f32.mrb[13].mxu0 }
 0x169   :  { %v872_v27 = vmax.f32 %v861_v22, 0.0  ;;  %v1312_v28 = vadd.f32 %v1311_v25, %v1310_v23  ;;  %v1339_v29 = vpop.f32.mrb[13].mxu1  ;;  %v1313_v30 = vpop.f32.mrb[14].mxu0 }
 0x16a   :  { %v1340_v31 = vadd.f32 %v1339_v29, %v1338_v24  ;;  %v1341_v32 = vpop.f32.mrb[14].mxu1  ;;  %v1314_v33 = vpop.f32.mrb[15].mxu0 }
 0x16b   :  { %v818_v34 = vadd.f32 %v1312_v28, %v770_v6  ;;  %v1342_v35 = vpop.f32.mrb[15].mxu1  ;;  %v874_v36 = vpack.c.bf16 %v872_v27, %v871_v26 }
 0x16d   :  { %v866_v37 = vadd.f32 %v1340_v31, %v818_v34  ;;  %1380 = vmatprep.mubr.bf16.mxu0 %v874_v36 }
 0x16f   :  { %v873_v38 = vmax.f32 %v866_v37, 0.0 }
 0x171   :  { %v875_v39 = vpack.c.bf16 %v873_v38, %v873_v38 }
 0x173   :  { %1381 = vmatmul.mubr.bf16.vlgmr.msra.gmra.mrb[16].mxu0 %v875_v39 }
 0x246   :  { %v1382_v43 = vpop.f32.mrb[16].mxu0 }
 0x247   :  { %v990_v44 = vadd.f32 %v1382_v43, %v1215_v42  ;;  %v981_v45 = vpop.f32.mrb[17].mxu0 }
 0x248   :  { %v982_v46 = vadd.f32 %v1215_v42, %v981_v45  ;;  %v1383_v47 = vpop.f32.mrb[18].mxu0 }
 0x249   :  { %v984_v48 = vpop.f32.mrb[19].mxu0  ;;  %v997_v50 = vmax.f32 %v990_v44, 0.0 }
 0x24a   :  { %v985_v49 = vadd.f32 %v1215_v42, %v984_v48  ;;  %v995_v51 = vmax.f32 %v982_v46, 0.0 }
 0x24b   :  { %v999_v54 = vpack.c.bf16 %v997_v50, %v997_v50 }
 0x24c   :  { %v996_v52 = vmax.f32 %v985_v49, 0.0 }
 0x24e   :  { %v998_v53 = vpack.c.bf16 %v996_v52, %v995_v51 }
 0x250   :  { %1400 = vmatprep.mubr.bf16.mxu1 %v998_v53 }
 0x251   :  { %1401 = vmatmul.mubr.bf16.vlgmr.msra.gmra.mrb[16].mxu1 %v999_v54 }
 0x324   :  { %v1402_v55 = vpop.f32.mrb[16].mxu1 }
 0x325   :  { %1114 = vst [vmem:[#allocation10 + $0x10] sm:$0xff] %v1402_v55  ;;  %v1098_v56 = vpop.f32.mrb[17].mxu1 }
 0x326   :  { %1112 = vst [vmem:[#allocation10] sm:$0xff] %v1098_v56  ;;  %v1403_v57 = vpop.f32.mrb[18].mxu1 }
 0x327   :  { %v1101_v58 = vpop.f32.mrb[19].mxu1 }
 0x328   :  { %1113 = vst [vmem:[#allocation10 + $0x8] sm:$0xff] %v1101_v58 }
 0x329   :  { %1602 = shalt.err (!%p1599_p8)
}
 0x32a   :  { %s1603_s27 = scalar_lea.hbm %s1755_s6, 384 }
 0x32b   :  { %p1604_p9 = scmp.ne.s32.totalorder %s1755_s6, %s1603_s27  ;;  %p1607_p10 = scmp.lt.u32.totalorder %s1603_s27, %s1755_s6 }
 0x32d   :  { %p1609_p11 = pnand %p1607_p10, %p1604_p9 }
 0x32f   :  { %1612 = shalt.err (!%p1609_p11)
}
 0x330   :  { %s1630_s10 = smov 128   ;;  %s1631_s11 = smov 8  }
 0x331   :  { %1126 = dma.vmem_to_hbm [thread:$0]  %s1121_s24, 384, %s1755_s6, [#allocation4], %s1630_s10, %s1630_s10, %s1631_s11  }
 0x332   :  { %1619 = dma.done.wait [#allocation4], 384  }
 0x333   :  { %1620 = vsyncadd [#allocation4], 4294966912 }
 0x334   :  { %1130 = vsyncpa [#allocation3], 1 }
 0x335   :  { %1131 = vsyncpa [#allocation6], 1 }
 0x336   :  { %1132 = vsyncpa [#allocation9], 1 }
 0x337   :  { %1133 = vsyncpa [#allocation4], 1 }

</bundles_post_ra>
